<compile_context>
chip_gen: v7x
topology: tpu7x:2x2x1
jax: 0.10.0
libtpu: 0.0.40
codegen_flags: <defaults>
</compile_context>

<pallas_src>
import functools

import jax
import jax.numpy as jnp
from jax.experimental import pallas as pl
from jax.experimental.pallas import tpu as pltpu


def _focal_smooth_kernel(pred_ref, label_ref, spt_ref, sce_ref,
                         *, alpha, gamma, eps, n_total, c_total):
    """Per core-split, accumulates over its batch tiles:
         spt += sum_i (1 - p_t_i)^gamma
         sce += sum_i (-alpha_i * CE_i)
       where CE_i = sum_c smooth_ic * log_softmax(pred)_ic (reference "CEloss").
    """
    @pl.when(pl.program_id(1) == 0)
    def _init():
        spt_ref[...] = jnp.zeros_like(spt_ref)
        sce_ref[...] = jnp.zeros_like(sce_ref)

    pred = pred_ref[...]                               # (T, C) native dtype
    lab = label_ref[...]                               # (T, 1) int32
    t, c = pred.shape

    # Global row offset of this tile (core_split * tiles_per_core + local tile).
    global_tile = pl.program_id(0) * pl.num_programs(1) + pl.program_id(1)
    row0 = global_tile * t
    row_ids = row0 + jax.lax.broadcasted_iota(jnp.int32, (t, 1), 0)
    valid = row_ids < n_total                          # masks partial / clamped tiles

    # Numerically stable log-softmax pieces (class dim on lanes).
    m = jnp.max(pred, axis=1, keepdims=True).astype(jnp.float32)        # (T, 1)
    z = pred.astype(jnp.float32) - m                                     # (T, C) f32, feeds exp only
    se = jnp.sum(jnp.exp(z), axis=1, keepdims=True)                      # (T, 1)
    lse = jnp.log(se)                                                    # (T, 1)

    # True-class gather and row sum on the native-dtype logits (fewer live
    # (T,C) f32 temporaries; `z` is not re-read).
    iota_c = jax.lax.broadcasted_iota(jnp.int32, (t, c), 1)
    pred_true = jnp.sum(jnp.where(iota_c == lab, pred, jnp.zeros_like(pred)),
                        axis=1, keepdims=True, dtype=jnp.float32)        # (T, 1)
    pred_sum = jnp.sum(pred, axis=1, keepdims=True, dtype=jnp.float32)   # (T, 1)

    logp_true = pred_true - m - lse                                      # (T, 1)
    sum_logp = pred_sum - float(c_total) * (m + lse)                     # (T, 1)

    # sum_c smooth * log_prob  with smooth = onehot*(1-eps) + (1-onehot)*eps/(C-1)
    eps_off = eps / (c_total - 1)
    ce = (1.0 - eps - eps_off) * logp_true + eps_off * sum_logp          # (T, 1)

    pt = jnp.exp(logp_true)                            # softmax prob of true class
    alpha_i = jnp.where(lab == 1, alpha, 1.0 - alpha).astype(jnp.float32)
    focal_w = (1.0 - pt) ** gamma                                        # (T, 1)

    # Scalar partials, broadcast across all 128 lanes (lane-dense store).
    spt_ref[...] += jnp.sum(jnp.where(valid, focal_w, 0.0))
    sce_ref[...] += jnp.sum(jnp.where(valid, -alpha_i * ce, 0.0))


def _choose_tile_n(n, c, itemsize,
                   target_pred_bytes=4 * 1024 * 1024,
                   vmem_budget_bytes=32 * 1024 * 1024):
    """Byte-based batch tile: ~4 MiB of logits (native dtype) per grid step,
    capped so (2x double-buffered native input + ~3 f32 (T,C) temporaries)
    fits a VMEM budget that is safe on v7x (64 MiB physical) and conservative
    but sufficient on v5e/v6e (128 MiB physical)."""
    bytes_per_row_working = c * (2 * itemsize + 3 * 4) + 2 * 4
    rows_budget = max(8, vmem_budget_bytes // bytes_per_row_working)
    rows_target = max(8, target_pred_bytes // max(1, c * itemsize))
    tile = min(n, rows_budget, rows_target)
    if tile < n:
        tile -= tile % 8                  # sublane alignment for non-full blocks
    return max(1, int(tile))


def focal_loss_with_label_smooth(pred, label, alpha=0.25, gamma=2, eps=0.1,
                                 tile_n=None, core_splits=None):
    """pred: (N, C) logits (any float dtype); label: (N,) int labels. Scalar f32."""
    n, c = pred.shape
    label2d = label.reshape(n, 1).astype(jnp.int32)
    itemsize = int(jnp.dtype(pred.dtype).itemsize)

    if tile_n is None:
        tile_n = _choose_tile_n(n, c, itemsize)
    tile_n = max(1, min(int(tile_n), n))

    tiles_total = int(pl.cdiv(n, tile_n))
    if core_splits is None:
        core_splits = 2 if tiles_total >= 2 else 1   # v7x megacore; harmless on v5e/v6e
    core_splits = max(1, min(int(core_splits), tiles_total))
    tiles_per_core = int(pl.cdiv(tiles_total, core_splits))

    def in_map(core, i):
        # Clamp so overshoot steps on the last core re-read a valid block;
        # their rows are fully masked out inside the kernel.
        return (jnp.minimum(core * tiles_per_core + i, tiles_total - 1), 0)

    def out_map(core, i):
        return (core, 0, 0)

    # Working-set-derived VMEM limit, capped at 48 MiB for v7x headroom.
    work_bytes = (2 * tile_n * c * itemsize     # double-buffered logits
                  + 2 * tile_n * 4              # double-buffered labels
                  + 4 * tile_n * c * 4          # f32 compute temporaries (generous)
                  + 2 * 1024 * 1024)            # Mosaic internal scratch headroom
    vmem_limit = int(min(max(work_bytes, 16 * 1024 * 1024), 48 * 1024 * 1024))

    cost = pl.CostEstimate(
        flops=int(8 * n * c),
        transcendentals=int(n * c + 4 * n),
        bytes_accessed=int(n * c * itemsize + n * 4 + 2 * core_splits * 128 * 4),
    )

    kern = functools.partial(
        _focal_smooth_kernel, alpha=float(alpha), gamma=gamma, eps=float(eps),
        n_total=n, c_total=c)

    spt, sce = pl.pallas_call(
        kern,
        grid=(core_splits, tiles_per_core),
        in_specs=[
            pl.BlockSpec((tile_n, c), in_map),     # logits, native dtype
            pl.BlockSpec((tile_n, 1), in_map),     # labels
        ],
        out_specs=[
            pl.BlockSpec((1, 1, 128), out_map),    # per-core S_pt partial
            pl.BlockSpec((1, 1, 128), out_map),    # per-core S_ce partial
        ],
        out_shape=[
            jax.ShapeDtypeStruct((core_splits, 1, 128), jnp.float32),
            jax.ShapeDtypeStruct((core_splits, 1, 128), jnp.float32),
        ],
        compiler_params=pltpu.CompilerParams(
            dimension_semantics=("parallel", "arbitrary"),
            vmem_limit_bytes=vmem_limit,
        ),
        cost_estimate=cost,
    )(pred, label2d)

    s_pt = jnp.sum(spt[:, 0, 0])
    s_ce = jnp.sum(sce[:, 0, 0])
    # mean of the reference's (N, N) broadcast == S_pt * S_ce / N^2
    return (s_pt * s_ce) / jnp.float32(n * n)


def _reference(pred, label, alpha=0.25, gamma=2, eps=0.1):
    """Plain-JAX replica of the PyTorch forward (including the (N,N) broadcast)."""
    pred = pred.astype(jnp.float32)
    n, c = pred.shape
    one_hot = jax.nn.one_hot(label, c, dtype=jnp.float32)
    smooth = one_hot * (1.0 - eps) + (1.0 - one_hot) * (eps / (c - 1))
    log_prob = jax.nn.log_softmax(pred, axis=1)
    ce = jnp.sum(smooth * log_prob, axis=1)                  # (N,)
    p = jax.nn.softmax(pred, axis=1)
    probs = jnp.sum(p * one_hot, axis=1, keepdims=True)      # (N, 1)
    alpha_v = jnp.where(label == 1, alpha, 1.0 - alpha)      # (N,)
    batch_loss = -alpha_v * (1.0 - probs) ** gamma * ce      # (N, N) like torch
    return jnp.mean(batch_loss)


if __name__ == "__main__":
    key = jax.random.PRNGKey(0)
    k_pred, k_lab = jax.random.split(key)

    N, C = 20, 32
    pred = jax.random.normal(k_pred, (N, C), dtype=jnp.float32)
    label = jax.random.randint(k_lab, (N,), 0, C, dtype=jnp.int32)

    # tile_n=8 -> 3 batch tiles over a 2-way core split: exercises the clamped
    # overshoot tile, the masked partial tile, and the per-core partial sums.
    loss = focal_loss_with_label_smooth(pred, label, alpha=0.25, gamma=2,
                                        eps=0.1, tile_n=8)
    jax.block_until_ready(loss)

    ref = _reference(pred, label, alpha=0.25, gamma=2, eps=0.1)
    assert jnp.allclose(loss, ref, rtol=2e-4, atol=1e-6), (float(loss), float(ref))
    print("KERNEL_OK")
</pallas_src>

<mosaic_0001>
module attributes {stable_mosaic.version = 11 : i64} {
  func.func @_focal_smooth_kernel(%arg0: i32, %arg1: i32, %arg2: memref<8x32xf32, #tpu.memory_space<vmem>>, %arg3: memref<8x1xi32, #tpu.memory_space<vmem>>, %arg4: memref<1x1x128xf32, #tpu.memory_space<vmem>>, %arg5: memref<1x1x128xf32, #tpu.memory_space<vmem>>) attributes {dimension_semantics = [#tpu.dimension_semantics<parallel>, #tpu.dimension_semantics<arbitrary>], iteration_bounds = array<i64: 2, 2>, scalar_prefetch = 0 : i64, scratch_operands = 0 : i64, tpu.core_type = #tpu.core_type<tc>, window_params = [{transform_indices = @transform_0, window_bounds = array<i64: 8, 32>}, {transform_indices = @transform_1, window_bounds = array<i64: 8, 1>}, {transform_indices = @transform_2, window_bounds = array<i64: 1, 1, 128>}, {transform_indices = @transform_3, window_bounds = array<i64: 1, 1, 128>}]} {
    %c0_i32 = arith.constant 0 : i32
    %0 = arith.cmpi eq, %arg1, %c0_i32 : i32
    %1 = arith.extui %0 : i1 to i32
    %c0_i32_0 = arith.constant 0 : i32
    %2 = arith.cmpi ne, %1, %c0_i32_0 : i32
    scf.if %2 {
      %cst_31 = arith.constant 0.000000e+00 : f32
      %73 = vector.broadcast %cst_31 : f32 to vector<1x1x128xf32>
      %c0_32 = arith.constant 0 : index
      %c0_33 = arith.constant 0 : index
      %c0_34 = arith.constant 0 : index
      %74 = vector.load %arg4[%c0_32, %c0_33, %c0_34] : memref<1x1x128xf32, #tpu.memory_space<vmem>>, vector<1x1x128xf32>
      tpu.vector_store %arg4[%c0_32, %c0_33, %c0_34], %73 {strides = array<i32>} : memref<1x1x128xf32, #tpu.memory_space<vmem>>, vector<1x1x128xf32>,
      %cst_35 = arith.constant 0.000000e+00 : f32
      %75 = vector.broadcast %cst_35 : f32 to vector<1x1x128xf32>
      %c0_36 = arith.constant 0 : index
      %c0_37 = arith.constant 0 : index
      %c0_38 = arith.constant 0 : index
      %76 = vector.load %arg5[%c0_36, %c0_37, %c0_38] : memref<1x1x128xf32, #tpu.memory_space<vmem>>, vector<1x1x128xf32>
      tpu.vector_store %arg5[%c0_36, %c0_37, %c0_38], %75 {strides = array<i32>} : memref<1x1x128xf32, #tpu.memory_space<vmem>>, vector<1x1x128xf32>,
    } else {
    }
    %c0 = arith.constant 0 : index
    %c0_1 = arith.constant 0 : index
    %3 = vector.load %arg2[%c0, %c0_1] : memref<8x32xf32, #tpu.memory_space<vmem>>, vector<8x32xf32>
    %c0_2 = arith.constant 0 : index
    %c0_3 = arith.constant 0 : index
    %4 = vector.load %arg3[%c0_2, %c0_3] : memref<8x1xi32, #tpu.memory_space<vmem>>, vector<8x1xi32>
    %c2_i32 = arith.constant 2 : i32
    %5 = arith.muli %arg0, %c2_i32 : i32
    %6 = arith.addi %5, %arg1 : i32
    %c8_i32 = arith.constant 8 : i32
    %7 = arith.muli %6, %c8_i32 : i32
    %8 = tpu.iota {dimensions = array<i32: 0>} : vector<8x1xi32>
    %9 = vector.broadcast %7 : i32 to vector<8x1xi32>
    %10 = arith.addi %9, %8 : vector<8x1xi32>
    %c20_i32 = arith.constant 20 : i32
    %11 = vector.broadcast %c20_i32 : i32 to vector<8x1xi32>
    %12 = arith.cmpi slt, %10, %11 : vector<8x1xi32>
    %cst = arith.constant dense<0xFF800000> : vector<8xf32>
    %13 = vector.multi_reduction <maximumf>, %3, %cst [1] : vector<8x32xf32> to vector<8xf32>
    %14 = vector.shape_cast %13 : vector<8xf32> to vector<8x1xf32>
    %15 = vector.broadcast %14 : vector<8x1xf32> to vector<8x32xf32>
    %16 = arith.subf %3, %15 : vector<8x32xf32>
    %17 = math.exp %16 : vector<8x32xf32>
    %cst_4 = arith.constant dense<0.000000e+00> : vector<8xf32>
    %18 = vector.multi_reduction <add>, %17, %cst_4 [1] : vector<8x32xf32> to vector<8xf32>
    %19 = vector.shape_cast %18 : vector<8xf32> to vector<8x1xf32>
    %20 = math.log %19 : vector<8x1xf32>
    %21 = tpu.iota {dimensions = array<i32: 1>} : vector<8x32xi32>
    %22 = vector.broadcast %4 : vector<8x1xi32> to vector<8x32xi32>
    %23 = arith.cmpi eq, %21, %22 : vector<8x32xi32>
    %cst_5 = arith.constant 0.000000e+00 : f32
    %24 = vector.broadcast %cst_5 : f32 to vector<8x32xf32>
    %25 = arith.select %23, %3, %24 : vector<8x32xi1>, vector<8x32xf32>
    %cst_6 = arith.constant dense<0.000000e+00> : vector<8xf32>
    %26 = vector.multi_reduction <add>, %25, %cst_6 [1] : vector<8x32xf32> to vector<8xf32>
    %27 = vector.shape_cast %26 : vector<8xf32> to vector<8x1xf32>
    %cst_7 = arith.constant dense<0.000000e+00> : vector<8xf32>
    %28 = vector.multi_reduction <add>, %3, %cst_7 [1] : vector<8x32xf32> to vector<8xf32>
    %29 = vector.shape_cast %28 : vector<8xf32> to vector<8x1xf32>
    %30 = arith.subf %27, %14 : vector<8x1xf32>
    %31 = arith.subf %30, %20 : vector<8x1xf32>
    %32 = arith.addf %14, %20 : vector<8x1xf32>
    %cst_8 = arith.constant 3.200000e+01 : f32
    %33 = vector.broadcast %cst_8 : f32 to vector<8x1xf32>
    %34 = arith.mulf %33, %32 : vector<8x1xf32>
    %35 = arith.subf %29, %34 : vector<8x1xf32>
    %cst_9 = arith.constant 0.896774172 : f32
    %36 = vector.broadcast %cst_9 : f32 to vector<8x1xf32>
    %37 = arith.mulf %36, %31 : vector<8x1xf32>
    %cst_10 = arith.constant 0.0032258064 : f32
    %38 = vector.broadcast %cst_10 : f32 to vector<8x1xf32>
    %39 = arith.mulf %38, %35 : vector<8x1xf32>
    %40 = arith.addf %37, %39 : vector<8x1xf32>
    %41 = math.exp %31 : vector<8x1xf32>
    %c1_i32 = arith.constant 1 : i32
    %42 = vector.broadcast %c1_i32 : i32 to vector<8x1xi32>
    %43 = arith.cmpi eq, %4, %42 : vector<8x1xi32>
    %cst_11 = arith.constant 2.500000e-01 : f32
    %cst_12 = arith.constant 7.500000e-01 : f32
    %44 = vector.broadcast %cst_11 : f32 to vector<8x1xf32>
    %45 = vector.broadcast %cst_12 : f32 to vector<8x1xf32>
    %46 = arith.select %43, %44, %45 : vector<8x1xi1>, vector<8x1xf32>
    %cst_13 = arith.constant 1.000000e+00 : f32
    %47 = vector.broadcast %cst_13 : f32 to vector<8x1xf32>
    %48 = arith.subf %47, %41 : vector<8x1xf32>
    %49 = arith.mulf %48, %48 : vector<8x1xf32>
    %c0_14 = arith.constant 0 : index
    %c0_15 = arith.constant 0 : index
    %c0_16 = arith.constant 0 : index
    %50 = vector.load %arg4[%c0_14, %c0_15, %c0_16] : memref<1x1x128xf32, #tpu.memory_space<vmem>>, vector<1x1x128xf32>
    %cst_17 = arith.constant 0.000000e+00 : f32
    %51 = vector.broadcast %cst_17 : f32 to vector<8x1xf32>
    %52 = arith.select %12, %49, %51 : vector<8x1xi1>, vector<8x1xf32>
    %53 = vector.shape_cast %52 : vector<8x1xf32> to vector<1x8x1xf32>
    %cst_18 = arith.constant dense<0.000000e+00> : vector<1xf32>
    %54 = vector.multi_reduction <add>, %53, %cst_18 [1, 2] : vector<1x8x1xf32> to vector<1xf32>
    %55 = vector.shape_cast %54 : vector<1xf32> to vector<1x1x1xf32>
    %56 = vector.extract %55[0, 0, 0] : f32 from vector<1x1x1xf32>
    %57 = vector.broadcast %56 : f32 to vector<1x1x128xf32>
    %58 = arith.addf %50, %57 : vector<1x1x128xf32>
    %c0_19 = arith.constant 0 : index
    %c0_20 = arith.constant 0 : index
    %c0_21 = arith.constant 0 : index
    %59 = vector.load %arg4[%c0_19, %c0_20, %c0_21] : memref<1x1x128xf32, #tpu.memory_space<vmem>>, vector<1x1x128xf32>
    tpu.vector_store %arg4[%c0_19, %c0_20, %c0_21], %58 {strides = array<i32>} : memref<1x1x128xf32, #tpu.memory_space<vmem>>, vector<1x1x128xf32>,
    %c0_22 = arith.constant 0 : index
    %c0_23 = arith.constant 0 : index
    %c0_24 = arith.constant 0 : index
    %60 = vector.load %arg5[%c0_22, %c0_23, %c0_24] : memref<1x1x128xf32, #tpu.memory_space<vmem>>, vector<1x1x128xf32>
    %cst_25 = arith.constant 0.000000e+00 : f32
    %61 = vector.broadcast %cst_25 : f32 to vector<8x1xf32>
    %62 = arith.subf %61, %46 : vector<8x1xf32>
    %63 = arith.mulf %62, %40 : vector<8x1xf32>
    %cst_26 = arith.constant 0.000000e+00 : f32
    %64 = vector.broadcast %cst_26 : f32 to vector<8x1xf32>
    %65 = arith.select %12, %63, %64 : vector<8x1xi1>, vector<8x1xf32>
    %66 = vector.shape_cast %65 : vector<8x1xf32> to vector<1x8x1xf32>
    %cst_27 = arith.constant dense<0.000000e+00> : vector<1xf32>
    %67 = vector.multi_reduction <add>, %66, %cst_27 [1, 2] : vector<1x8x1xf32> to vector<1xf32>
    %68 = vector.shape_cast %67 : vector<1xf32> to vector<1x1x1xf32>
    %69 = vector.extract %68[0, 0, 0] : f32 from vector<1x1x1xf32>
    %70 = vector.broadcast %69 : f32 to vector<1x1x128xf32>
    %71 = arith.addf %60, %70 : vector<1x1x128xf32>
    %c0_28 = arith.constant 0 : index
    %c0_29 = arith.constant 0 : index
    %c0_30 = arith.constant 0 : index
    %72 = vector.load %arg5[%c0_28, %c0_29, %c0_30] : memref<1x1x128xf32, #tpu.memory_space<vmem>>, vector<1x1x128xf32>
    tpu.vector_store %arg5[%c0_28, %c0_29, %c0_30], %71 {strides = array<i32>} : memref<1x1x128xf32, #tpu.memory_space<vmem>>, vector<1x1x128xf32>,
    return
  }
  func.func @transform_0(%arg0: i32, %arg1: i32) -> (i32, i32) {
    %c2_i32 = arith.constant 2 : i32
    %0 = arith.muli %arg0, %c2_i32 : i32
    %1 = arith.addi %0, %arg1 : i32
    %c2_i32_0 = arith.constant 2 : i32
    %2 = arith.minsi %1, %c2_i32_0 : i32
    %c0_i32 = arith.constant 0 : i32
    %c0_i32_1 = arith.constant 0 : i32
    return %2, %c0_i32 : i32, i32
  }
  func.func @transform_1(%arg0: i32, %arg1: i32) -> (i32, i32) {
    %c2_i32 = arith.constant 2 : i32
    %0 = arith.muli %arg0, %c2_i32 : i32
    %1 = arith.addi %0, %arg1 : i32
    %c2_i32_0 = arith.constant 2 : i32
    %2 = arith.minsi %1, %c2_i32_0 : i32
    %c0_i32 = arith.constant 0 : i32
    %c0_i32_1 = arith.constant 0 : i32
    return %2, %c0_i32 : i32, i32
  }
  func.func @transform_2(%arg0: i32, %arg1: i32) -> (i32, i32, i32) {
    %c0_i32 = arith.constant 0 : i32
    %c0_i32_0 = arith.constant 0 : i32
    %c0_i32_1 = arith.constant 0 : i32
    return %arg0, %c0_i32, %c0_i32_0 : i32, i32, i32
  }
  func.func @transform_3(%arg0: i32, %arg1: i32) -> (i32, i32, i32) {
    %c0_i32 = arith.constant 0 : i32
    %c0_i32_0 = arith.constant 0 : i32
    %c0_i32_1 = arith.constant 0 : i32
    return %arg0, %c0_i32, %c0_i32_0 : i32, i32, i32
  }
}

</mosaic_0001>

<bundles_post_ra>
// kernel: tpu_custom_call.1
= control target key start
LH: loop header
LB: loop body
LE: loop exit
PB: predicated region body
PF: predicated region fallthrough
CT: control target
= control target key end

     0   :  { %9 = vsyncpa [#allocation3], 0  ;;  %s953_s0 = inlined_call_operand.vmem [shape: f32[20,32], index: 0, kind: input, shape index: {}]   ;;  %s954_s1 = inlined_call_operand.vmem [shape: s32[20,1], index: 1, kind: input, shape index: {}]   ;;  %s955_s2 = inlined_call_operand.hbm [shape: f32[2,1,128], index: 2, kind: output, shape index: {0}]   ;;  %s956_s3 = inlined_call_operand.hbm [shape: f32[2,1,128], index: 3, kind: output, shape index: {1}]  }
   0x1   :  { %11 = vsyncpa [#allocation3 + $0x1], 0 }
   0x2   :  { %12 = vsyncpa [#allocation5], 0 }
   0x3   :  { %14 = vsyncpa [#allocation5 + $0x1], 0  ;;  %s753_s12 = smov 0   ;;  %s755_s13 = smov 0  }
   0x4   :  { %s757_s14 = smov 0   ;;  %s759_s15 = smov 0  }
   0x5   :  { %s761_s16 = smov 0   ;;  %s763_s17 = smov 0  }
   0x6   :  { %s765_s18 = smov 0   ;;  %s767_s19 = smov 0  }
   0x7 LB: > { %s484_s20 = sadd.s32 4294967295, %s726_s19   ;;  %s485_s21 = sadd.s32 4294967294, %s726_s19   ;;  %s726_s19 = sphi %s767_s19, %s20_s19   ;;  %s722_s18 = sphi %s765_s18, %s965_s18   ;;  %s718_s17 = sphi %s763_s17, %s964_s17   ;;  %s714_s16 = sphi %s761_s16, %s963_s16   ;;  %s710_s15 = sphi %s759_s15, %s962_s15   ;;  %s706_s14 = sphi %s757_s14, %s961_s14   ;;  %s702_s13 = sphi %s755_s13, %s960_s13   ;;  %s698_s12 = sphi %s753_s12, %s959_s12  }
   0x8   : > { %s29_s22 = sadd.s32 1, %s718_s17  ;;  %s32_s23 = sadd.s32 1, %s722_s18 }
   0x9   : > { %p30_p0 = scmp.ge.s32.totalorder %s29_s22, 2  ;;  %p117_p1 = scmp.ne.s32.totalorder %s706_s14, %s702_s13 }
   0xa   : > { %p118_p2 = scmp.eq.s32.totalorder %s484_s20, 3  ;;  %p123_p4 = scmp.ne.s32.totalorder %s702_s13, %s698_s12 }
   0xb   : > { %s967_s22 = smov (%p30_p0, %s29_s22), 0  ;;  %s969_s23 = smov (!%p30_p0, %s32_s23), %s722_s18 }
   0xc   : > { %p802_p3 = por %p118_p2, %p117_p1  ;;  %p34_p5 = scmp.ge.s32.totalorder %s969_s23, 2 }
   0xd   : > { %p124_p6 = scmp.eq.s32.totalorder %s485_s21, 3  ;;  %p492_p7 = scmp.ge.s32.totalorder %s726_s19, 1 }
   0xe   : > { %p198_p8 = scmp.lt.s32.totalorder %s726_s19, 5  ;;  %s971_s23 = smov (%p34_p5, %s969_s23), 0 }
   0xf   : > { %p812_p9 = por %p124_p6, %p123_p4  ;;  %s104_s26 = ssub.s32 %s722_s18, %s971_s23 }
  0x10   : > { %p199_p10 = pnand %p492_p7, %p198_p8  ;;  %s107_s27 = sadd.s32 1, %s706_s14 }
  0x11   : > { %p105_p11 = scmp.eq.s32.totalorder %s104_s26, 0  ;;  %s823_s29 = sand.u32 (!%p199_p10), 1, %s702_s13  }
  0x12   : > { %202 = sbr.rel (%p199_p10) target bundleno = 616 (0x268), region = 28  ;;  %s493_s30 = sshll.u32 (!%p199_p10), %s714_s16, 1 }
  0x13   : > { %s820_s28 = scalar_select %p105_p11, %s706_s14, %s107_s27  }
  0x14   : > { %s827_s4 = sadd.s32 (!%p199_p10), %s710_s15, %s493_s30  ;;  %s838_s21 = scalar_lea.vmem (!%p199_p10), [#allocation2], %s823_s29 }
  0x15   : > { %p238_p12 = scmp.lt.s32.totalorder (!%p199_p10), %s827_s4, 2  ;;  %s841_s26 = scalar_lea.vmem (!%p199_p10), [#allocation4], %s823_s29 }
  0x16   : > { %p503_p13 = scmp.ne.s32.totalorder (!%p199_p10), %s710_s15, 0 }
  0x19   : > { %s239_s5 = scalar_select %p238_p12, %s827_s4, 2 }
  0x1a   : > { %263 = sbr.rel (%p503_p13) target bundleno = 33 (0x21), region = 32  ;;  %v728_v0 = vmov (!%p503_p13), 0.0  }
  0x1b   : > { %s973_s5 = smov (!%p238_p12, %s239_s5), 2  ;;  %264 = vst [vmem:[%s838_s21] sm:$0x1] (!%p503_p13), %v728_v0  ;;  %265 = vst [vmem:[%s841_s26] sm:$0x1] (!%p503_p13), %v728_v0 }
  0x1c   : > { %s497_s6 = sshll.u32 %s973_s5, 3 }
  0x1d   : > { %s243_s9 = scalar_lea.vmem %s953_s0, %s497_s6  ;;  %s255_s20 = scalar_lea.vmem %s954_s1, %s497_s6 }
  0x21 PF: > { %v266_v1 = vld [vmem:[%s243_s9] sm:$0xff]  ;;  %vm276_vm0 = vcmask 261120   ;;  %v729_v3 = vmov 0   ;;  %v271_v8 = vlaneseq  ;;  %s505_s15 = sshll.u32 %s827_s4, 3  ;;  %v730_v28 = vmov 0.75   ;;  %s506_s27 = sshll.u32 %s714_s16, 4 }
  0x22   : > { %v277_v2 = vsel %vm276_vm0, %v266_v1, -inf  ;;  %593 = vset.pattern.permute.xlu0 %v729_v3  ;;  %v267_v4 = vld [vmem:[%s255_s20] sm:$0xff]  ;;  %v298_v15 = vsel %vm276_vm0, %v266_v1, 0.0  ;;  %v273_v32 = vstv %s505_s15  ;;  %vm317_vm4 = vcmask 7168   ;;  %s365_s30 = sshll.u32 %s838_s21, 4  ;;  %s859_s7 = scalar_lea.hbm %s955_s2, %s506_s27  ;;  %s861_s30 = int_to_ptr.vmem [resolvable:$true] %s365_s30 }
  0x23   : > { %278 = vmax.xlane.f32.xlu0 %v277_v2  ;;  %v289_v9 = vand.u32 127, %v271_v8  ;;  %vm311_vm2 = vcmp.eq.s32.totalorder %v267_v4, 1  ;;  %v272_v30 = vshrl.u32 %v271_v8, 7  ;;  %v315_v58 = vld [vmem:[%s838_s21] sm:$0x1]  ;;  %s378_s8 = sshll.u32 %s841_s26, 4  ;;  %s900_s8 = int_to_ptr.vmem [resolvable:$true] %s378_s8 }
  0x24   : > { %v312_v29 = vsel %vm311_vm2, 0.25, %v730_v28  ;;  %v331_v61 = vld [vmem:[%s841_s26] sm:$0x1]  ;;  %s349_s10 = scalar_lea.sflag [#allocation3], %s823_s29  ;;  %s600_s11 = scalar_lea.vmem %s861_s30, 16 }
  0x25   : > { %v332_v33 = vsub.f32 0.0, %v312_v29  ;;  %v274_v36 = vadd.s32 %v273_v32, %v272_v30  ;;  %p601_p0 = scmp.ne.s32.totalorder %s861_s30, %s600_s11  ;;  %s731_s20 = smov [#allocation2]  }
  0x26   : > { %s604_s15 = sshll.u32 %s731_s20, 4  ;;  %s605_s15 = int_to_ptr.vmem [resolvable:$false] %s604_s15 }
  0x27   : > { %vm275_vm3 = vcmp.lt.s32.totalorder %v274_v36, 20  ;;  %p602_p1 = pnand %p601_p0, %p802_p3  ;;  %p607_p4 = scmp.lt.s32.totalorder %s861_s30, %s605_s15 }
  0x29   : > { %p603_p2 = pneg %p602_p1 }
  0x39   : > { %291 = vperm.xlu0 %593, %v267_v4  }
  0xb0   : > { %v279_v5 = vpop.xlane.xlu0 %278 }
  0xb1   : > { %v280_v6 = vsub.f32 %v266_v1, %v279_v5 }
  0xb3   : > { %v281_v7 = vmul.f32 1.442695, %v280_v6 }
  0xb5   : > { %594 = vpow2.f32 %v281_v7 }
  0xb8   : > { %v292_v10 = vpop.permute.xlu0 %291 }
  0xb9   : > { %vm293_vm1 = vcmp.eq.s32.totalorder %v289_v9, %v292_v10 }
  0xba   : > { %v294_v12 = vsel %vm293_vm1, %v266_v1, 0.0 }
  0xbb   : > { %v295_v14 = vsel %vm276_vm0, %v294_v12, 0.0 }
  0xbf   : > { %v595_v11 = vpop.eup %594 }
  0xc0   : > { %v283_v13 = vsel %vm276_vm0, %v595_v11, 0.0 }
  0xc1   : > { %284 = vadd.xlane.f32.xlu1 %v283_v13 }
  0xc5   : > { %296 = vadd.xlane.f32.xlu1 %v295_v14 }
  0xc9   : > { %299 = vadd.xlane.f32.xlu1 %v298_v15 }
 0x14e   : > { %v285_v16 = vpop.xlane.xlu1 %284 }
 0x14f   : > { %596 = vlog2.f32 %v285_v16 }
 0x152   : > { %v297_v17 = vpop.xlane.xlu1 %296 }
 0x153   : > { %v301_v20 = vsub.f32 %v297_v17, %v279_v5 }
 0x156   : > { %v300_v25 = vpop.xlane.xlu1 %299 }
 0x159   : > { %v597_v18 = vpop.eup %596 }
 0x15a   : > { %v287_v19 = vmul.f32 0.6931472, %v597_v18 }
 0x15c   : > { %v302_v21 = vsub.f32 %v301_v20, %v287_v19  ;;  %v303_v22 = vadd.f32 %v287_v19, %v279_v5 }
 0x15e   : > { %v309_v23 = vmul.f32 1.442695, %v302_v21  ;;  %v304_v24 = vmul.f32 32.0, %v303_v22  ;;  %v306_v31 = vmul.f32 0.8967742, %v302_v21 }
 0x160   : > { %598 = vpow2.f32 %v309_v23  ;;  %v305_v26 = vsub.f32 %v300_v25, %v304_v24 }
 0x162   : > { %v307_v27 = vmul.f32 0.0032258064, %v305_v26 }
 0x164   : > { %v308_v34 = vadd.f32 %v307_v27, %v306_v31 }
 0x166   : > { %v333_v39 = vmul.f32 %v332_v33, %v308_v34 }
 0x168   : > { %v334_v42 = vsel %vm275_vm3, %v333_v39, 0.0 }
 0x169   : > { %v335_v43 = vsel %vm317_vm4, %v334_v42, 0.0 }
 0x16a   : > { %v599_v35 = vpop.eup %598 }
 0x16b   : > { %v313_v37 = vsub.f32 1.0, %v599_v35 }
 0x16d   : > { %v314_v38 = vmul.f32 %v313_v37, %v313_v37 }
 0x16f   : > { %v316_v40 = vsel %vm275_vm3, %v314_v38, 0.0 }
 0x170   : > { %v318_v41 = vsel %vm317_vm4, %v316_v40, 0.0 }
 0x171   : > { %319 = vadd.xlane.f32.xlu1 %v318_v41 }
 0x175   : > { %336 = vadd.xlane.f32.xlu1 %v335_v43 }
 0x1fe   : > { %v320_v44 = vpop.xlane.xlu1 %319 }
 0x1ff   : > { %v321_v45 = vrot.slane %v320_v44, 4 }
 0x201   : > { %v322_v46 = vadd.f32 %v321_v45, %v320_v44 }
 0x202   : > { %v337_v47 = vpop.xlane.xlu1 %336 }
 0x203   : > { %v323_v48 = vrot.slane %v322_v46, 2  ;;  %v338_v49 = vrot.slane %v337_v47, 4 }
 0x205   : > { %v339_v50 = vadd.f32 %v338_v49, %v337_v47  ;;  %v324_v51 = vadd.f32 %v323_v48, %v322_v46 }
 0x207   : > { %v340_v52 = vrot.slane %v339_v50, 2  ;;  %v325_v53 = vrot.slane %v324_v51, 1 }
 0x209   : > { %v341_v54 = vadd.f32 %v340_v52, %v339_v50  ;;  %v326_v55 = vadd.f32 %v325_v53, %v324_v51 }
 0x20b   : > { %510 = vpush %v326_v55  ;;  %v342_v56 = vrot.slane %v341_v54, 1 }
 0x20d   : > { %v343_v57 = vadd.f32 %v342_v56, %v341_v54 }
 0x20f   : > { %512 = vpush %v343_v57 }
 0x23c   : > { %s511_s4 = spop %510 }
 0x23d   : > { %v328_v59 = vstv %s511_s4  ;;  %s606_s4 = scalar_lea.vmem %s605_s15, 32 }
 0x23e   : > { %v329_v60 = vadd.f32 %v328_v59, %v315_v58  ;;  %p608_p5 = scmp.lt.s32.totalorder %s606_s4, %s600_s11 }
 0x240   : > { %330 = vst [vmem:[%s838_s21] sm:$0x1] %v329_v60  ;;  %s866_s9 = spop %512  ;;  %p609_p6 = por %p608_p5, %p607_p4 }
 0x241   : > { %v345_v62 = vstv %s866_s9 }
 0x242   : > { %p610_p7 = pnand %p609_p6, %p603_p2 }
 0x244   : > { %613 = shalt.err (!%p610_p7)
}
 0x245   : > { %s614_s21 = scalar_lea.hbm %s859_s7, 16  ;;  %s618_s9 = scalar_lea.hbm %s955_s2, 32 }
 0x246   : > { %p615_p8 = scmp.ne.s32.totalorder %s859_s7, %s614_s21  ;;  %p619_p12 = scmp.lt.u32.totalorder %s859_s7, %s955_s2 }
 0x247   : > { %p620_p13 = scmp.lt.u32.totalorder %s618_s9, %s614_s21  ;;  %p622_p1 = scmp.lt.u32.totalorder %s614_s21, %s859_s7 }
 0x248   : > { %p616_p10 = pnand %p615_p8, %p802_p3 }
 0x249   : > { %p621_p0 = por %p620_p13, %p619_p12 }
 0x24a   : > { %p617_p11 = pneg %p616_p10 }
 0x24b   : > { %p623_p2 = por %p622_p1, %p621_p0 }
 0x24d   : > { %p624_p4 = pnand %p623_p2, %p617_p11 }
 0x24f   : > { %627 = shalt.err (!%p624_p4)
}
 0x250   : > { %514 = dma.vmem_to_hbm [thread:$0]  (%p802_p3), %s861_s30, 16, %s859_s7, %s349_s10   ;;  %v346_v63 = vadd.f32 %v345_v62, %v331_v61 }
 0x251   : > { %s896_s5 = scalar_lea.hbm %s956_s3, %s506_s27  ;;  %s353_s21 = scalar_lea.sflag [#allocation5], %s823_s29 }
 0x252   : > { %347 = vst [vmem:[%s841_s26] sm:$0x1] %v346_v63  ;;  %s628_s6 = scalar_lea.vmem %s900_s8, 16  ;;  %s732_s30 = smov [#allocation4]  }
 0x253   : > { %p629_p5 = scmp.ne.s32.totalorder %s900_s8, %s628_s6  ;;  %s632_s16 = sshll.u32 %s732_s30, 4  ;;  %s633_s16 = int_to_ptr.vmem [resolvable:$false] %s632_s16 }
 0x254   : > { %s634_s7 = scalar_lea.vmem %s633_s16, 32  ;;  %p635_p8 = scmp.lt.s32.totalorder %s900_s8, %s633_s16 }
 0x255   : > { %p630_p6 = pnand %p629_p5, %p802_p3  ;;  %p636_p10 = scmp.lt.s32.totalorder %s634_s7, %s628_s6 }
 0x257   : > { %p631_p7 = pneg %p630_p6  ;;  %p637_p11 = por %p636_p10, %p635_p8 }
 0x259   : > { %p638_p12 = pnand %p637_p11, %p631_p7 }
 0x25b   : > { %641 = shalt.err (!%p638_p12)
}
 0x25c   : > { %s642_s29 = scalar_lea.hbm %s896_s5, 16  ;;  %s646_s10 = scalar_lea.hbm %s956_s3, 32 }
 0x25d   : > { %p643_p13 = scmp.ne.s32.totalorder %s896_s5, %s642_s29  ;;  %p647_p2 = scmp.lt.u32.totalorder %s896_s5, %s956_s3 }
 0x25e   : > { %p648_p4 = scmp.lt.u32.totalorder %s646_s10, %s642_s29  ;;  %p650_p6 = scmp.lt.u32.totalorder %s642_s29, %s896_s5 }
 0x25f   : > { %p644_p0 = pnand %p643_p13, %p802_p3 }
 0x260   : > { %p649_p5 = por %p648_p4, %p647_p2 }
 0x261   : > { %p645_p1 = pneg %p644_p0 }
 0x262   : > { %p651_p7 = por %p650_p6, %p649_p5 }
 0x264   : > { %p652_p8 = pnand %p651_p7, %p645_p1 }
 0x266   : > { %655 = shalt.err (!%p652_p8)
}
 0x267   : > { %515 = dma.vmem_to_hbm [thread:$0]  (%p802_p3), %s900_s8, 16, %s896_s5, %s353_s21  }
 0x268 PF: > { %p525_p10 = scmp.ge.s32.totalorder %s726_s19, 2  ;;  %s390_s15 = sand.u32 1, %s698_s12  }
 0x269   : > { %s391_s11 = scalar_lea.sflag [#allocation3], %s390_s15 }
 0x26a   : > { %p519_p11 = pnand %p525_p10, %p812_p9 }
 0x26c   : > { %689 = dma.done.wait (!%p519_p11), %s391_s11, 16  }
 0x26d   : > { %691 = vsyncadd (!%p519_p11), %s391_s11, 4294967280  ;;  %s399_s4 = scalar_lea.sflag [#allocation5], %s390_s15 }
 0x26e   : > { %693 = dma.done.wait (!%p519_p11), %s399_s4, 16  }
 0x26f   : > { %695 = vsyncadd (!%p519_p11), %s399_s4, 4294967280  ;;  %s20_s19 = sadd.s32 1, %s726_s19   ;;  %s959_s12 = smov %s702_s13 }
 0x270   : > { %p17_p12 = scmp.ge.s32.totalorder %s20_s19, 6   ;;  %s960_s13 = smov %s706_s14 }
 0x271   : > { %s961_s14 = smov %s820_s28  ;;  %s962_s15 = smov %s718_s17 }
 0x272   : > { %s963_s16 = smov %s722_s18  ;;  %s964_s17 = smov %s967_s22 }
 0x273   : > { %s965_s18 = smov %s971_s23  ;;  %19 = sbr.rel (!%p17_p12) target bundleno = 7 (0x7), region = 87 }
 0x27a   :  { %403 = vsyncpa [#allocation3], 1 }
 0x27b   :  { %405 = vsyncpa [#allocation3 + $0x1], 1 }
 0x27c   :  { %406 = vsyncpa [#allocation5], 1 }
 0x27d   :  { %408 = vsyncpa [#allocation5 + $0x1], 1 }

</bundles_post_ra>
